<compile_context>
chip_gen: v7x
topology: tpu7x:2x2x1
jax: 0.10.0
libtpu: 0.0.40
codegen_flags: <defaults>
</compile_context>

<pallas_src>
import functools

import jax
import jax.numpy as jnp
from jax import lax
from jax.experimental import pallas as pl
from jax.experimental.pallas import tpu as pltpu


def _round_up(x, m):
    return ((x + m - 1) // m) * m


def _pick_vmem_limit():
    # Per-generation VMEM budget: v5e/v6e have 128 MiB, v7x 64 MiB per TC.
    try:
        cap = int(pltpu.get_tpu_info().vmem_capacity_bytes)
    except Exception:  # defensive fallback: assume the smallest (v7x) part
        cap = 64 * 1024 * 1024
    return max(32 * 1024 * 1024, min(cap // 2, 64 * 1024 * 1024))


# --------------------- fused conv(+BN)+ReLU matmul kernel ----------------------

def _conv_bn_relu_kernel(a_ref, b_ref, bias_ref, o_ref, acc_ref):
    """One (tm,tn) output tile: acc += A_tile @ B_tile over K; bias+ReLU epilogue."""
    k = pl.program_id(2)

    @pl.when(k == 0)
    def _init():
        acc_ref[...] = jnp.zeros_like(acc_ref)

    acc_ref[...] += jnp.dot(a_ref[...], b_ref[...],
                            preferred_element_type=jnp.float32)

    @pl.when(k == pl.num_programs(2) - 1)
    def _finalize():
        y = acc_ref[...] + bias_ref[...]          # folded BN shift, f32 epilogue
        o_ref[...] = jnp.maximum(y, 0.0).astype(o_ref.dtype)


def fused_matmul_bias_relu(a, b, bias):
    """relu(a @ b + bias). a:(M,K) bf16, b:(K,N) bf16, bias:(N,) f32 -> (M,N) f32."""
    M, K = a.shape
    Kb, N = b.shape
    assert K == Kb

    # Lane-align N on the weight/bias only (padded once, constant-folded).
    Np = _round_up(N, 128)
    if Np != N:
        b = jnp.pad(b, ((0, 0), (0, Np - N)))
        bias = jnp.pad(bias, ((0, Np - N),))
    bias2 = bias.reshape(1, Np).astype(jnp.float32)

    # Tile sizes: 256-wide MXU tiles when shapes allow (v6e/v7x), else 128.
    tn = 256 if Np % 256 == 0 else 128
    tm = 256 if (M >= 256 and M % 256 == 0) else 128
    Mp = _round_up(M, tm)
    if Mp != M:
        a = jnp.pad(a, ((0, Mp - M), (0, 0)))
    if K % 256 == 0:
        tk = 256
    elif K % 128 == 0:
        tk = 128
    else:
        tk = K  # single full-K block: no activation pad copy needed

    grid = (Mp // tm, Np // tn, K // tk)

    out = pl.pallas_call(
        _conv_bn_relu_kernel,
        out_shape=jax.ShapeDtypeStruct((Mp, Np), jnp.float32),
        grid_spec=pltpu.PrefetchScalarGridSpec(
            num_scalar_prefetch=0,
            grid=grid,
            in_specs=[
                pl.BlockSpec((tm, tk), lambda i, j, k: (i, k)),
                pl.BlockSpec((tk, tn), lambda i, j, k: (k, j)),
                pl.BlockSpec((1, tn), lambda i, j, k: (0, j)),
            ],
            out_specs=pl.BlockSpec((tm, tn), lambda i, j, k: (i, j)),
            scratch_shapes=[pltpu.VMEM((tm, tn), jnp.float32)],
        ),
        compiler_params=pltpu.CompilerParams(
            dimension_semantics=("parallel", "parallel", "arbitrary"),
            vmem_limit_bytes=_pick_vmem_limit(),
        ),
    )(a, b, bias2)
    return out[:M, :N]


# ------------------------------- BasicConv2d ----------------------------------

def _im2col(x_nhwc, kh, kw, stride, pad):
    N, H, W, C = x_nhwc.shape
    Ho = (H + 2 * pad - kh) // stride + 1
    Wo = (W + 2 * pad - kw) // stride + 1
    if kh == 1 and kw == 1 and stride == 1 and pad == 0:
        return x_nhwc.reshape(N * H * W, C), (N, H, W)
    xp = jnp.pad(x_nhwc, ((0, 0), (pad, pad), (pad, pad), (0, 0)))
    cols = []
    for i in range(kh):
        for j in range(kw):
            cols.append(xp[:, i:i + stride * Ho:stride, j:j + stride * Wo:stride, :])
    patches = jnp.concatenate(cols, axis=-1)  # (N, Ho, Wo, kh*kw*C)
    return patches.reshape(N * Ho * Wo, kh * kw * C), (N, Ho, Wo)


def basic_conv2d(x_nchw, weight, gamma, beta, mean, var, *, stride=1, padding=0,
                 eps=1e-3):
    """relu(BatchNorm2d(Conv2d(x, bias=False), eps=0.001)) — inference BN."""
    x = jnp.transpose(x_nchw.astype(jnp.float32), (0, 2, 3, 1))  # NCHW -> NHWC
    cout, cin, kh, kw = weight.shape

    # Fold inference BN into the conv (in f32, before any bf16 cast).
    scale = gamma.astype(jnp.float32) * lax.rsqrt(var.astype(jnp.float32) + eps)
    shift = beta.astype(jnp.float32) - mean.astype(jnp.float32) * scale
    w_mat = jnp.transpose(weight.astype(jnp.float32), (2, 3, 1, 0))
    w_mat = w_mat.reshape(kh * kw * cin, cout) * scale[None, :]

    patches, (N, Ho, Wo) = _im2col(x, kh, kw, stride, padding)
    # TODO(synk): for large inputs, stream the kh*kw taps through the K grid axis
    #             instead of materializing the im2col concat in HBM.
    y = fused_matmul_bias_relu(patches.astype(jnp.bfloat16),
                               w_mat.astype(jnp.bfloat16),
                               shift)
    y = y.reshape(N, Ho, Wo, cout)
    return jnp.transpose(y, (0, 3, 1, 2))  # NHWC -> NCHW


# ------------------------------ pure-JAX reference -----------------------------

def _reference(x, weight, gamma, beta, mean, var, stride, padding, eps=1e-3):
    y = lax.conv_general_dilated(
        x, weight, window_strides=(stride, stride),
        padding=[(padding, padding), (padding, padding)],
        dimension_numbers=("NCHW", "OIHW", "NCHW"))
    scale = gamma * lax.rsqrt(var + eps)
    shift = beta - mean * scale
    y = y * scale[None, :, None, None] + shift[None, :, None, None]
    return jnp.maximum(y, 0.0)


# ----------------------------------- main --------------------------------------

if __name__ == "__main__":
    key = jax.random.PRNGKey(0)
    k1, k2, k3, k4, k5, k6 = jax.random.split(key, 6)

    N, Cin, H, W = 2, 4, 16, 16
    Cout, ksz, stride, padding = 32, 3, 1, 1

    x = jax.random.normal(k1, (N, Cin, H, W), jnp.float32)
    weight = jax.random.normal(k2, (Cout, Cin, ksz, ksz), jnp.float32)
    weight = weight * (2.0 / (Cin * ksz * ksz)) ** 0.5
    gamma = jax.random.uniform(k3, (Cout,), jnp.float32, minval=0.5, maxval=1.5)
    beta = jax.random.normal(k4, (Cout,), jnp.float32) * 0.1
    mean = jax.random.normal(k5, (Cout,), jnp.float32) * 0.1
    var = jax.random.uniform(k6, (Cout,), jnp.float32, minval=0.5, maxval=1.5)

    fwd = jax.jit(functools.partial(basic_conv2d, stride=stride, padding=padding))
    out = fwd(x, weight, gamma, beta, mean, var)
    jax.block_until_ready(out)

    Ho = (H + 2 * padding - ksz) // stride + 1
    Wo = (W + 2 * padding - ksz) // stride + 1
    assert out.shape == (N, Cout, Ho, Wo), out.shape
    assert bool(jnp.all(jnp.isfinite(out)))
    assert bool(jnp.all(out >= 0.0))

    ref = _reference(x, weight, gamma, beta, mean, var, stride, padding)
    assert bool(jnp.allclose(out, ref, rtol=5e-2, atol=5e-2)), (
        f"max abs err vs XLA reference: {float(jnp.max(jnp.abs(out - ref)))}")

    print("KERNEL_OK")
</pallas_src>

<mosaic_0001>
module attributes {stable_mosaic.version = 11 : i64} {
  func.func @_conv_bn_relu_kernel(%arg0: i32, %arg1: i32, %arg2: i32, %arg3: memref<256x36xbf16, #tpu.memory_space<vmem>>, %arg4: memref<36x128xbf16, #tpu.memory_space<vmem>>, %arg5: memref<1x128xf32, #tpu.memory_space<vmem>>, %arg6: memref<256x128xf32, #tpu.memory_space<vmem>>, %arg7: memref<256x128xf32, #tpu.memory_space<vmem>>) attributes {dimension_semantics = [#tpu.dimension_semantics<parallel>, #tpu.dimension_semantics<parallel>, #tpu.dimension_semantics<arbitrary>], iteration_bounds = array<i64: 2, 1, 1>, scalar_prefetch = 0 : i64, scratch_operands = 1 : i64, tpu.core_type = #tpu.core_type<tc>, window_params = [{transform_indices = @transform_0, window_bounds = array<i64: 256, 36>}, {transform_indices = @transform_1, window_bounds = array<i64: 36, 128>}, {transform_indices = @transform_2, window_bounds = array<i64: 1, 128>}, {transform_indices = @transform_3, window_bounds = array<i64: 256, 128>}]} {
    %c0_i32 = arith.constant 0 : i32
    %0 = arith.cmpi eq, %arg2, %c0_i32 : i32
    %1 = arith.extui %0 : i1 to i32
    %c0_i32_0 = arith.constant 0 : i32
    %2 = arith.cmpi ne, %1, %c0_i32_0 : i32
    scf.if %2 {
      %cst_10 = arith.constant 0.000000e+00 : f32
      %12 = vector.broadcast %cst_10 : f32 to vector<256x128xf32>
      %c0_11 = arith.constant 0 : index
      %c0_12 = arith.constant 0 : index
      %13 = vector.load %arg7[%c0_11, %c0_12] : memref<256x128xf32, #tpu.memory_space<vmem>>, vector<256x128xf32>
      tpu.vector_store %arg7[%c0_11, %c0_12], %12 {strides = array<i32>} : memref<256x128xf32, #tpu.memory_space<vmem>>, vector<256x128xf32>,
    } else {
    }
    %c0 = arith.constant 0 : index
    %c0_1 = arith.constant 0 : index
    %3 = vector.load %arg7[%c0, %c0_1] : memref<256x128xf32, #tpu.memory_space<vmem>>, vector<256x128xf32>
    %c0_2 = arith.constant 0 : index
    %c0_3 = arith.constant 0 : index
    %4 = vector.load %arg3[%c0_2, %c0_3] : memref<256x36xbf16, #tpu.memory_space<vmem>>, vector<256x36xbf16>
    %c0_4 = arith.constant 0 : index
    %c0_5 = arith.constant 0 : index
    %5 = vector.load %arg4[%c0_4, %c0_5] : memref<36x128xbf16, #tpu.memory_space<vmem>>, vector<36x128xbf16>
    %cst = arith.constant dense<0.000000e+00> : vector<256x128xf32>
    %6 = tpu.matmul %4, %5, %cst {dimension_numbers = #tpu.dot_dimension_numbers<[1], [0], [0], [1], [0, 0, 1, 1], [], []>} : vector<256x36xbf16>, vector<36x128xbf16>, vector<256x128xf32> -> vector<256x128xf32>
    %7 = arith.addf %3, %6 : vector<256x128xf32>
    %c0_6 = arith.constant 0 : index
    %c0_7 = arith.constant 0 : index
    %8 = vector.load %arg7[%c0_6, %c0_7] : memref<256x128xf32, #tpu.memory_space<vmem>>, vector<256x128xf32>
    tpu.vector_store %arg7[%c0_6, %c0_7], %7 {strides = array<i32>} : memref<256x128xf32, #tpu.memory_space<vmem>>, vector<256x128xf32>,
    %c0_i32_8 = arith.constant 0 : i32
    %9 = arith.cmpi eq, %arg2, %c0_i32_8 : i32
    %10 = arith.extui %9 : i1 to i32
    %c0_i32_9 = arith.constant 0 : i32
    %11 = arith.cmpi ne, %10, %c0_i32_9 : i32
    scf.if %11 {
      %c0_10 = arith.constant 0 : index
      %c0_11 = arith.constant 0 : index
      %12 = vector.load %arg7[%c0_10, %c0_11] : memref<256x128xf32, #tpu.memory_space<vmem>>, vector<256x128xf32>
      %c0_12 = arith.constant 0 : index
      %c0_13 = arith.constant 0 : index
      %13 = vector.load %arg5[%c0_12, %c0_13] : memref<1x128xf32, #tpu.memory_space<vmem>>, vector<1x128xf32>
      %14 = vector.broadcast %13 : vector<1x128xf32> to vector<256x128xf32>
      %15 = arith.addf %12, %14 : vector<256x128xf32>
      %cst_14 = arith.constant 0.000000e+00 : f32
      %16 = vector.broadcast %cst_14 : f32 to vector<256x128xf32>
      %17 = arith.maximumf %15, %16 : vector<256x128xf32>
      %c0_15 = arith.constant 0 : index
      %c0_16 = arith.constant 0 : index
      %18 = vector.load %arg6[%c0_15, %c0_16] : memref<256x128xf32, #tpu.memory_space<vmem>>, vector<256x128xf32>
      tpu.vector_store %arg6[%c0_15, %c0_16], %17 {strides = array<i32>} : memref<256x128xf32, #tpu.memory_space<vmem>>, vector<256x128xf32>,
    } else {
    }
    return
  }
  func.func @transform_0(%arg0: i32, %arg1: i32, %arg2: i32) -> (i32, i32) {
    %c0_i32 = arith.constant 0 : i32
    return %arg0, %arg2 : i32, i32
  }
  func.func @transform_1(%arg0: i32, %arg1: i32, %arg2: i32) -> (i32, i32) {
    %c0_i32 = arith.constant 0 : i32
    return %arg2, %arg1 : i32, i32
  }
  func.func @transform_2(%arg0: i32, %arg1: i32, %arg2: i32) -> (i32, i32) {
    %c0_i32 = arith.constant 0 : i32
    %c0_i32_0 = arith.constant 0 : i32
    return %c0_i32, %arg1 : i32, i32
  }
  func.func @transform_3(%arg0: i32, %arg1: i32, %arg2: i32) -> (i32, i32) {
    %c0_i32 = arith.constant 0 : i32
    return %arg0, %arg1 : i32, i32
  }
}

</mosaic_0001>

<bundles_post_ra>
// kernel: basic_conv2d.1
= control target key start
LH: loop header
LB: loop body
LE: loop exit
PB: predicated region body
PF: predicated region fallthrough
CT: control target
= control target key end

     0   :  { %8 = vsyncpa [#allocation4], 0  ;;  %s1520_s0 = inlined_call_operand.vmem [shape: bf16[512,36], index: 0, kind: input, shape index: {}]   ;;  %s1521_s1 = inlined_call_operand.vmem [shape: bf16[36,128], index: 1, kind: input, shape index: {}]   ;;  %s1522_s2 = inlined_call_operand.vmem [shape: f32[1,128], index: 2, kind: input, shape index: {}]   ;;  %s1523_s3 = inlined_call_operand.hbm [shape: f32[512,128], index: 3, kind: output, shape index: {}]  }
   0x1   :  { %10 = vsyncpa [#allocation4 + $0x1], 0  ;;  %s1287_s12 = smov 0   ;;  %s1289_s13 = smov 0  }
   0x2   :  { %s1291_s14 = smov 0   ;;  %s1293_s15 = smov 0  }
   0x3   :  { %s1295_s16 = smov 0   ;;  %s1297_s17 = smov 0  }
   0x4 LB: > { %s991_s18 = sadd.s32 4294967295, %s1262_s17   ;;  %s992_s19 = sadd.s32 4294967294, %s1262_s17   ;;  %s1262_s17 = sphi %s1297_s17, %s16_s17   ;;  %s1258_s16 = sphi %s1295_s16, %s1530_s16   ;;  %s1254_s15 = sphi %s1293_s15, %s1529_s15   ;;  %s1250_s14 = sphi %s1291_s14, %s1528_s14   ;;  %s1246_s13 = sphi %s1289_s13, %s1527_s13   ;;  %s1242_s12 = sphi %s1287_s12, %s1526_s12  }
   0x5   : > { %s35_s20 = sadd.s32 1, %s1258_s16  ;;  %s126_s21 = sadd.s32 1, %s1250_s14 }
   0x6   : > { %p37_p0 = scmp.ge.s32.totalorder %s35_s20, 2  ;;  %p136_p1 = scmp.ne.s32.totalorder %s1250_s14, %s1246_s13 }
   0x7   : > { %p137_p2 = scmp.eq.s32.totalorder %s991_s18, 1  ;;  %p142_p3 = scmp.ne.s32.totalorder %s1246_s13, %s1242_s12 }
   0x8   : > { %s1532_s20 = smov (%p37_p0, %s35_s20), 0  ;;  %p143_p5 = scmp.eq.s32.totalorder %s992_s19, 1 }
   0x9   : > { %p1327_p4 = por %p137_p2, %p136_p1  ;;  %s121_s23 = ssub.s32 %s1258_s16, %s1532_s20 }
   0xa   : > { %p997_p6 = scmp.ge.s32.totalorder %s1262_s17, 1  ;;  %p124_p7 = scmp.eq.s32.totalorder %s121_s23, 0 }
   0xb   : > { %p1334_p8 = por %p143_p5, %p142_p3  ;;  %p191_p9 = scmp.lt.s32.totalorder %s1262_s17, 3 }
   0xc   : > { %s1340_s25 = scalar_select %p124_p7, %s1250_s14, %s126_s21  }
   0xd   : > { %p192_p10 = pnand %p997_p6, %p191_p9 }
   0xe   : > { %v1165_v0 = vld [vmem:[%s1521_s1] sm:$0xff] (!%p192_p10)   ;;  %v1166_v1 = vld [vmem:[%s1521_s1 + $0x8] sm:$0xff] (!%p192_p10)   ;;  %s999_s30 = sshll.u32 (!%p192_p10), %s1254_s15, 5  ;;  %v1167_v2 = vld [vmem:[%s1521_s1 + $0x10] ss:$0 sps:$4 sm:$0x33] (!%p192_p10)  }
   0xf   : > { %195 = sbr.rel (%p192_p10) target bundleno = 286 (0x11e), region = 32  ;;  %1062 = vmatprep.subr.bf16.mxu0 (!%p192_p10), %v1165_v0  ;;  %1100 = vmatprep.subr.bf16.mxu1 (!%p192_p10), %v1165_v0  ;;  %p230_p11 = scmp.lt.s32.totalorder (!%p192_p10), %s999_s30, 63  ;;  %vm501_vm0 = vcmask (!%p192_p10), 1041408   ;;  %vm452_vm1 = vcmask (!%p192_p10), 293888   ;;  %v1393_v20 = vld [vmem:[%s1522_s2] ss:$0 sm:$0xff] (!%p192_p10) }
  0x10   : > { %1063 = vmatpush3.bf16.msra.mxu0 (!%p192_p10), %v1165_v0  ;;  %1103 = vmatpush3.bf16.msra.mxu1 (!%p192_p10), %v1165_v0  ;;  %v503_v3 = vsel (!%p192_p10), %vm501_vm0, %v1167_v2, 0  ;;  %s226_s10 = sand.u32 (!%p192_p10), 1, %s1246_s13   ;;  %s1042_s23 = sshll.u32 (!%p192_p10), %s1254_s15, 12 }
  0x11   : > { %1064 = vmatprep.subr.bf16.mxu0 (!%p192_p10), %v1166_v1  ;;  %1101 = vmatprep.subr.bf16.mxu1 (!%p192_p10), %v1166_v1  ;;  %s998_s19 = sshll.u32 (!%p192_p10), %s226_s10, 8  ;;  %s1462_s28 = scalar_lea.hbm (!%p192_p10), %s1523_s3, %s1042_s23 }
  0x12   : > { %s1405_s21 = scalar_lea.vmem (!%p192_p10), [#allocation3], %s998_s19  ;;  %s1474_s29 = scalar_lea.sflag (!%p192_p10), [#allocation4], %s226_s10 }
  0x13   : > { %s883_s26 = sshll.u32 (!%p192_p10), %s1405_s21, 4  ;;  %s1264_s4 = smov (!%p192_p10), [#allocation3]   ;;  %s1464_s26 = int_to_ptr.vmem [resolvable:$true] %s883_s26 }
  0x14   : > { %1065 = vmatpush3.bf16.msra.mxu0 (!%p192_p10), %v1166_v1  ;;  %1104 = vmatpush3.bf16.msra.mxu1 (!%p192_p10), %v1166_v1  ;;  %s1188_s5 = sshll.u32 (!%p192_p10), %s1264_s4, 4  ;;  %s1189_s5 = int_to_ptr.vmem [resolvable:$false] %s1188_s5 }
  0x15   : > { %1106 = vmatprep.subr.msk.bf16.mxu0 (!%p192_p10), %vm501_vm0, %v1167_v2  ;;  %1107 = vmatprep.subr.msk.bf16.mxu1 (!%p192_p10), %vm501_vm0, %v1167_v2  ;;  %p1191_p1 = scmp.lt.s32.totalorder (!%p192_p10), %s1464_s26, %s1189_s5 }
  0x16   : > { %s1534_s30 = smov (!%p230_p11, %s999_s30), 63 }
  0x17   : > { %s1000_s6 = sshll.u32 %s1534_s30, 2  ;;  %s1184_s30 = scalar_lea.vmem %s1464_s26, 4096 }
  0x18   : > { %s1355_s9 = scalar_lea.vmem %s1520_s0, %s1000_s6  ;;  %1067 = vmatpush3.bf16.msra.mxu0 %v503_v3  ;;  %1105 = vmatpush3.bf16.msra.mxu1 %v503_v3  ;;  %p1185_p12 = scmp.ne.s32.totalorder %s1464_s26, %s1184_s30 }
  0x19   : > { %v1168_v4 = vld [vmem:[%s1355_s9] sm:$0xff]   ;;  %v1170_v6 = vld [vmem:[%s1355_s9 + $0x8] sm:$0xff]   ;;  %v1172_v8 = vld [vmem:[%s1355_s9 + $0x10] sm:$0xff]   ;;  %s1190_s6 = scalar_lea.vmem %s1189_s5, 8192 }
  0x1a   : > { %v1169_v5 = vld [vmem:[%s1355_s9 + $0x40] sm:$0xff]   ;;  %1068 = vmatprep.mubr.msk.bf16.mxu0 %vm452_vm1, %v1168_v4  ;;  %v1171_v7 = vld [vmem:[%s1355_s9 + $0x48] sm:$0xff]   ;;  %v1173_v9 = vld [vmem:[%s1355_s9 + $0x50] sm:$0xff]   ;;  %p1186_p13 = pnand %p1185_p12, %p1327_p4  ;;  %p1192_p2 = scmp.lt.s32.totalorder %s1190_s6, %s1184_s30 }
  0x1b   : > { %1084 = vmatprep.mubr.msk.bf16.mxu1 %vm452_vm1, %v1169_v5  ;;  %1069 = vmatmul.mubr.msk.bf16.vlgmr.msra.gmra.mrb[0].mxu0 %vm452_vm1, %v1170_v6  ;;  %v1174_v10 = vld [vmem:[%s1355_s9 + $0x18] sm:$0xff]   ;;  %v1176_v12 = vld [vmem:[%s1355_s9 + $0x20] sm:$0xff]   ;;  %v1178_v14 = vld [vmem:[%s1355_s9 + $0x28] sm:$0xff]  }
  0x1c   : > { %1085 = vmatmul.mubr.msk.bf16.vlgmr.msra.gmra.mrb[0].mxu1 %vm452_vm1, %v1171_v7  ;;  %1072 = vmatprep.mubr.msk.bf16.mxu0 %vm452_vm1, %v1172_v8  ;;  %v1175_v11 = vld [vmem:[%s1355_s9 + $0x58] sm:$0xff]   ;;  %v1177_v13 = vld [vmem:[%s1355_s9 + $0x60] sm:$0xff]   ;;  %v1179_v15 = vld [vmem:[%s1355_s9 + $0x68] sm:$0xff]   ;;  %p1187_p0 = pneg %p1186_p13  ;;  %p1193_p3 = por %p1192_p2, %p1191_p1 }
  0x1d   : > { %1088 = vmatprep.mubr.msk.bf16.mxu1 %vm452_vm1, %v1173_v9  ;;  %v1180_v16 = vld [vmem:[%s1355_s9 + $0x30] sm:$0xff]   ;;  %v1182_v18 = vld [vmem:[%s1355_s9 + $0x38] sm:$0xff]  }
  0x1e   : > { %v1181_v17 = vld [vmem:[%s1355_s9 + $0x70] sm:$0xff]   ;;  %v1183_v19 = vld [vmem:[%s1355_s9 + $0x78] sm:$0xff]   ;;  %p1194_p5 = pnand %p1193_p3, %p1187_p0 }
  0x23   : > { %1073 = vmatmul.mubr.msk.bf16.gmra.mrb[4].mxu0 %vm452_vm1, %v1174_v10 }
  0x24   : > { %1089 = vmatmul.mubr.msk.bf16.gmra.mrb[4].mxu1 %vm452_vm1, %v1175_v11  ;;  %1076 = vmatprep.mubr.msk.bf16.mxu0 %vm452_vm1, %v1176_v12 }
  0x25   : > { %1092 = vmatprep.mubr.msk.bf16.mxu1 %vm452_vm1, %v1177_v13 }
  0x2b   : > { %1077 = vmatmul.mubr.msk.bf16.gmra.mrb[8].mxu0 %vm452_vm1, %v1178_v14 }
  0x2c   : > { %1093 = vmatmul.mubr.msk.bf16.gmra.mrb[8].mxu1 %vm452_vm1, %v1179_v15  ;;  %1080 = vmatprep.mubr.msk.bf16.mxu0 %vm452_vm1, %v1180_v16 }
  0x2d   : > { %1096 = vmatprep.mubr.msk.bf16.mxu1 %vm452_vm1, %v1181_v17 }
  0x33   : > { %1081 = vmatmul.mubr.msk.bf16.gmra.mrb[12].mxu0 %vm452_vm1, %v1182_v18 }
  0x34   : > { %1097 = vmatmul.mubr.msk.bf16.gmra.mrb[12].mxu1 %vm452_vm1, %v1183_v19 }
  0xee   : > { %v1070_v21 = vpop.f32.mrb[0].mxu0 }
  0xef   : > { %v1086_v22 = vpop.f32.mrb[0].mxu1  ;;  %v774_v23 = vadd.f32 %v1070_v21, %v1393_v20  ;;  %v539_v25 = vpop.f32.mrb[1].mxu0 }
  0xf0   : > { %v790_v24 = vadd.f32 %v1086_v22, %v1393_v20  ;;  %v603_v26 = vpop.f32.mrb[1].mxu1  ;;  %v772_v27 = vadd.f32 %v1393_v20, %v539_v25  ;;  %v1071_v29 = vpop.f32.mrb[2].mxu0 }
  0xf1   : > { %v788_v28 = vadd.f32 %v1393_v20, %v603_v26  ;;  %v1087_v30 = vpop.f32.mrb[2].mxu1  ;;  %v806_v31 = vmax.f32 %v774_v23, 0.0  ;;  %v775_v33 = vadd.f32 %v1071_v29, %v1393_v20  ;;  %v542_v35 = vpop.f32.mrb[3].mxu0 }
  0xf2   : > { %v822_v32 = vmax.f32 %v790_v24, 0.0  ;;  %v791_v34 = vadd.f32 %v1087_v30, %v1393_v20  ;;  %v606_v36 = vpop.f32.mrb[3].mxu1  ;;  %v804_v37 = vmax.f32 %v772_v27, 0.0  ;;  %v773_v39 = vadd.f32 %v1393_v20, %v542_v35 }
  0xf3   : > { %v820_v38 = vmax.f32 %v788_v28, 0.0  ;;  %v789_v40 = vadd.f32 %v1393_v20, %v606_v36  ;;  %838 = vst [vmem:[%s1405_s21 + $0x10] sm:$0xff] %v806_v31  ;;  %v807_v41 = vmax.f32 %v775_v33, 0.0 }
  0xf4   : > { %854 = vst [vmem:[%s1405_s21 + $0x90] sm:$0xff] %v822_v32  ;;  %v823_v42 = vmax.f32 %v791_v34, 0.0  ;;  %836 = vst [vmem:[%s1405_s21] sm:$0xff] %v804_v37  ;;  %v805_v43 = vmax.f32 %v773_v39, 0.0 }
  0xf5   : > { %852 = vst [vmem:[%s1405_s21 + $0x80] sm:$0xff] %v820_v38  ;;  %v821_v44 = vmax.f32 %v789_v40, 0.0  ;;  %839 = vst [vmem:[%s1405_s21 + $0x18] sm:$0xff] %v807_v41 }
  0xf6   : > { %855 = vst [vmem:[%s1405_s21 + $0x98] sm:$0xff] %v823_v42  ;;  %837 = vst [vmem:[%s1405_s21 + $0x8] sm:$0xff] %v805_v43  ;;  %v1074_v45 = vpop.f32.mrb[4].mxu0 }
  0xf7   : > { %853 = vst [vmem:[%s1405_s21 + $0x88] sm:$0xff] %v821_v44  ;;  %v1090_v46 = vpop.f32.mrb[4].mxu1  ;;  %v778_v47 = vadd.f32 %v1074_v45, %v1393_v20  ;;  %v555_v49 = vpop.f32.mrb[5].mxu0 }
  0xf8   : > { %v794_v48 = vadd.f32 %v1090_v46, %v1393_v20  ;;  %v619_v50 = vpop.f32.mrb[5].mxu1  ;;  %v776_v51 = vadd.f32 %v1393_v20, %v555_v49  ;;  %v1075_v53 = vpop.f32.mrb[6].mxu0 }
  0xf9   : > { %v792_v52 = vadd.f32 %v1393_v20, %v619_v50  ;;  %v1091_v54 = vpop.f32.mrb[6].mxu1  ;;  %v810_v55 = vmax.f32 %v778_v47, 0.0  ;;  %v779_v57 = vadd.f32 %v1075_v53, %v1393_v20  ;;  %v558_v59 = vpop.f32.mrb[7].mxu0 }
  0xfa   : > { %v826_v56 = vmax.f32 %v794_v48, 0.0  ;;  %v795_v58 = vadd.f32 %v1091_v54, %v1393_v20  ;;  %v622_v60 = vpop.f32.mrb[7].mxu1  ;;  %v808_v61 = vmax.f32 %v776_v51, 0.0  ;;  %v777_v63 = vadd.f32 %v1393_v20, %v558_v59 }
  0xfb   : > { %v824_v62 = vmax.f32 %v792_v52, 0.0  ;;  %v793_v0 = vadd.f32 %v1393_v20, %v622_v60  ;;  %842 = vst [vmem:[%s1405_s21 + $0x30] sm:$0xff] %v810_v55  ;;  %v811_v1 = vmax.f32 %v779_v57, 0.0 }
  0xfc   : > { %858 = vst [vmem:[%s1405_s21 + $0xb0] sm:$0xff] %v826_v56  ;;  %v827_v2 = vmax.f32 %v795_v58, 0.0  ;;  %840 = vst [vmem:[%s1405_s21 + $0x20] sm:$0xff] %v808_v61  ;;  %v809_v3 = vmax.f32 %v777_v63, 0.0 }
  0xfd   : > { %856 = vst [vmem:[%s1405_s21 + $0xa0] sm:$0xff] %v824_v62  ;;  %v825_v4 = vmax.f32 %v793_v0, 0.0  ;;  %843 = vst [vmem:[%s1405_s21 + $0x38] sm:$0xff] %v811_v1 }
  0xfe   : > { %859 = vst [vmem:[%s1405_s21 + $0xb8] sm:$0xff] %v827_v2  ;;  %841 = vst [vmem:[%s1405_s21 + $0x28] sm:$0xff] %v809_v3  ;;  %v1078_v5 = vpop.f32.mrb[8].mxu0 }
  0xff   : > { %857 = vst [vmem:[%s1405_s21 + $0xa8] sm:$0xff] %v825_v4  ;;  %v1094_v6 = vpop.f32.mrb[8].mxu1  ;;  %v782_v7 = vadd.f32 %v1078_v5, %v1393_v20  ;;  %v571_v9 = vpop.f32.mrb[9].mxu0 }
 0x100   : > { %v798_v8 = vadd.f32 %v1094_v6, %v1393_v20  ;;  %v635_v10 = vpop.f32.mrb[9].mxu1  ;;  %v780_v11 = vadd.f32 %v1393_v20, %v571_v9  ;;  %v1079_v13 = vpop.f32.mrb[10].mxu0 }
 0x101   : > { %v796_v12 = vadd.f32 %v1393_v20, %v635_v10  ;;  %v1095_v14 = vpop.f32.mrb[10].mxu1  ;;  %v814_v15 = vmax.f32 %v782_v7, 0.0  ;;  %v783_v17 = vadd.f32 %v1079_v13, %v1393_v20  ;;  %v574_v19 = vpop.f32.mrb[11].mxu0 }
 0x102   : > { %v830_v16 = vmax.f32 %v798_v8, 0.0  ;;  %v799_v18 = vadd.f32 %v1095_v14, %v1393_v20  ;;  %v638_v21 = vpop.f32.mrb[11].mxu1  ;;  %v812_v22 = vmax.f32 %v780_v11, 0.0  ;;  %v781_v24 = vadd.f32 %v1393_v20, %v574_v19 }
 0x103   : > { %v828_v23 = vmax.f32 %v796_v12, 0.0  ;;  %v797_v25 = vadd.f32 %v1393_v20, %v638_v21  ;;  %846 = vst [vmem:[%s1405_s21 + $0x50] sm:$0xff] %v814_v15  ;;  %v815_v26 = vmax.f32 %v783_v17, 0.0 }
 0x104   : > { %862 = vst [vmem:[%s1405_s21 + $0xd0] sm:$0xff] %v830_v16  ;;  %v831_v27 = vmax.f32 %v799_v18, 0.0  ;;  %844 = vst [vmem:[%s1405_s21 + $0x40] sm:$0xff] %v812_v22  ;;  %v813_v28 = vmax.f32 %v781_v24, 0.0 }
 0x105   : > { %860 = vst [vmem:[%s1405_s21 + $0xc0] sm:$0xff] %v828_v23  ;;  %v829_v29 = vmax.f32 %v797_v25, 0.0  ;;  %847 = vst [vmem:[%s1405_s21 + $0x58] sm:$0xff] %v815_v26 }
 0x106   : > { %863 = vst [vmem:[%s1405_s21 + $0xd8] sm:$0xff] %v831_v27  ;;  %845 = vst [vmem:[%s1405_s21 + $0x48] sm:$0xff] %v813_v28  ;;  %v1082_v30 = vpop.f32.mrb[12].mxu0 }
 0x107   : > { %861 = vst [vmem:[%s1405_s21 + $0xc8] sm:$0xff] %v829_v29  ;;  %v1098_v31 = vpop.f32.mrb[12].mxu1  ;;  %v786_v32 = vadd.f32 %v1082_v30, %v1393_v20  ;;  %v587_v34 = vpop.f32.mrb[13].mxu0 }
 0x108   : > { %v802_v33 = vadd.f32 %v1098_v31, %v1393_v20  ;;  %v651_v35 = vpop.f32.mrb[13].mxu1  ;;  %v784_v36 = vadd.f32 %v1393_v20, %v587_v34  ;;  %v1083_v38 = vpop.f32.mrb[14].mxu0 }
 0x109   : > { %v800_v37 = vadd.f32 %v1393_v20, %v651_v35  ;;  %v1099_v39 = vpop.f32.mrb[14].mxu1  ;;  %v818_v40 = vmax.f32 %v786_v32, 0.0  ;;  %v787_v42 = vadd.f32 %v1083_v38, %v1393_v20  ;;  %v590_v44 = vpop.f32.mrb[15].mxu0 }
 0x10a   : > { %v834_v41 = vmax.f32 %v802_v33, 0.0  ;;  %v803_v43 = vadd.f32 %v1099_v39, %v1393_v20  ;;  %v654_v45 = vpop.f32.mrb[15].mxu1  ;;  %v816_v46 = vmax.f32 %v784_v36, 0.0  ;;  %v785_v48 = vadd.f32 %v1393_v20, %v590_v44 }
 0x10b   : > { %v832_v47 = vmax.f32 %v800_v37, 0.0  ;;  %v801_v49 = vadd.f32 %v1393_v20, %v654_v45  ;;  %850 = vst [vmem:[%s1405_s21 + $0x70] sm:$0xff] %v818_v40  ;;  %v819_v50 = vmax.f32 %v787_v42, 0.0 }
 0x10c   : > { %866 = vst [vmem:[%s1405_s21 + $0xf0] sm:$0xff] %v834_v41  ;;  %v835_v51 = vmax.f32 %v803_v43, 0.0  ;;  %848 = vst [vmem:[%s1405_s21 + $0x60] sm:$0xff] %v816_v46  ;;  %v817_v52 = vmax.f32 %v785_v48, 0.0 }
 0x10d   : > { %864 = vst [vmem:[%s1405_s21 + $0xe0] sm:$0xff] %v832_v47  ;;  %v833_v53 = vmax.f32 %v801_v49, 0.0  ;;  %851 = vst [vmem:[%s1405_s21 + $0x78] sm:$0xff] %v819_v50 }
 0x10e   : > { %867 = vst [vmem:[%s1405_s21 + $0xf8] sm:$0xff] %v835_v51  ;;  %849 = vst [vmem:[%s1405_s21 + $0x68] sm:$0xff] %v817_v52 }
 0x10f   : > { %865 = vst [vmem:[%s1405_s21 + $0xe8] sm:$0xff] %v833_v53 }
 0x110   : > { %1197 = shalt.err (!%p1194_p5)
}
 0x111   : > { %s1198_s7 = scalar_lea.hbm %s1462_s28, 4096  ;;  %s1202_s10 = scalar_lea.hbm %s1523_s3, 8192 }
 0x112   : > { %p1199_p6 = scmp.ne.s32.totalorder %s1462_s28, %s1198_s7  ;;  %p1203_p10 = scmp.lt.u32.totalorder %s1462_s28, %s1523_s3 }
 0x113   : > { %p1204_p11 = scmp.lt.u32.totalorder %s1202_s10, %s1198_s7  ;;  %p1206_p13 = scmp.lt.u32.totalorder %s1198_s7, %s1462_s28 }
 0x114   : > { %p1200_p7 = pnand %p1199_p6, %p1327_p4 }
 0x115   : > { %p1205_p12 = por %p1204_p11, %p1203_p10 }
 0x116   : > { %p1201_p9 = pneg %p1200_p7 }
 0x117   : > { %p1207_p0 = por %p1206_p13, %p1205_p12 }
 0x119   : > { %p1208_p1 = pnand %p1207_p0, %p1201_p9 }
 0x11b   : > { %1211 = shalt.err (!%p1208_p1)
}
 0x11c   : > { %s1265_s19 = smov 128   ;;  %s1266_s21 = smov 8  }
 0x11d   : > { %1108 = dma.vmem_to_hbm [thread:$0]  (%p1327_p4), %s1464_s26, 4096, %s1462_s28, %s1474_s29, %s1265_s19, %s1265_s19, %s1266_s21  }
 0x11e PF: > { %p1114_p2 = scmp.ge.s32.totalorder %s1262_s17, 2  ;;  %s898_s23 = sand.u32 1, %s1242_s12  }
 0x11f   : > { %s899_s15 = scalar_lea.sflag [#allocation4], %s898_s23 }
 0x120   : > { %p1111_p3 = pnand %p1114_p2, %p1334_p8 }
 0x122   : > { %1237 = dma.done.wait (!%p1111_p3), %s899_s15, 4096  }
 0x123   : > { %1239 = vsyncadd (!%p1111_p3), %s899_s15, 4294963200  ;;  %s16_s17 = sadd.s32 1, %s1262_s17   ;;  %s1526_s12 = smov %s1246_s13 }
 0x124   : > { %p13_p5 = scmp.ge.s32.totalorder %s16_s17, 4   ;;  %s1527_s13 = smov %s1250_s14 }
 0x125   : > { %s1528_s14 = smov %s1340_s25  ;;  %s1529_s15 = smov %s1258_s16 }
 0x126   : > { %s1530_s16 = smov %s1532_s20  ;;  %15 = sbr.rel (!%p13_p5) target bundleno = 4 (0x4), region = 81 }
 0x12d   :  { %904 = vsyncpa [#allocation4], 1 }
 0x12e   :  { %906 = vsyncpa [#allocation4 + $0x1], 1 }

</bundles_post_ra>
